<compile_context>
chip_gen: v6e
topology: v6e:2x2x1
jax: 0.10.0
libtpu: 0.0.40
codegen_flags: <defaults>
</compile_context>

<pallas_src>
import functools

import jax
import jax.numpy as jnp
from jax import lax
from jax.experimental import pallas as pl
from jax.experimental.pallas import tpu as pltpu


# ---------------------------------------------------------------------------
# Kernel
# ---------------------------------------------------------------------------
def tt_forward_kernel(x_ref, g_ref, o_ref, *, compute_dtype=jnp.float32,
                      unroll_threshold=16):
    # x_ref: (n_dims, m, BT)   bf16/f32 -- batch on lanes, m on sublanes
    # g_ref: (n_dims, R, R*m)  bf16/f32 -- W_i[q, p*m + j] = G_i[p, j, q] (rank-padded)
    # o_ref: (1, BT)           f32      -- lane-dense result row
    n_dims, m, BT = x_ref.shape
    R = g_ref.shape[1]

    # Core 0: the left TT state is the phantom e_0, so the rank outer product
    # collapses to x_0 itself and only the p == 0 column block of W_0 matters.
    # Bit-identical to the generic path (dropped terms are exact zeros).
    w0 = g_ref[0][:, :m].astype(compute_dtype)                  # (R, m)
    x0 = x_ref[0].astype(compute_dtype)                         # (m, BT)
    v = jnp.dot(w0, x0, preferred_element_type=jnp.float32)     # (R, BT) f32 state

    def core_step(i, v, *, last):
        xi = x_ref[i].astype(compute_dtype)                     # (m, BT)
        # z[(p, j), b] = v[p, b] * x_i[j, b]   (VPU outer product, batch on lanes)
        z = (v.astype(compute_dtype)[:, None, :] * xi[None, :, :]).reshape(R * m, BT)
        wi = g_ref[i]                                           # (R, R*m)
        if last:
            wi = wi[0:1, :]      # right boundary: only output row 0 is needed
        # v_new[q, b] = sum_{p,j} G_i[p, j, q] * v[p, b] * x_i[j, b]  (one MXU push)
        return jnp.dot(wi.astype(compute_dtype), z,
                       preferred_element_type=jnp.float32)

    if n_dims > 1:
        if n_dims <= unroll_threshold:
            # Short static chain: full unroll keeps LLO scheduling visibility.
            for i in range(1, n_dims - 1):
                v = core_step(i, v, last=False)
        else:
            # Deep chain: bound live ranges of the (R*m, BT) temporaries.
            v = lax.fori_loop(1, n_dims - 1,
                              lambda i, vv: core_step(i, vv, last=False),
                              v, unroll=2)
        v = core_step(n_dims - 1, v, last=True)

    # Right boundary rank is 1, so the value is row 0: lane-dense (1, BT) store.
    o_ref[...] = v[0:1, :]


# ---------------------------------------------------------------------------
# Tile / VMEM heuristics
# ---------------------------------------------------------------------------
def _vmem_capacity_bytes():
    try:
        return int(pltpu.get_tpu_info().vmem_capacity_bytes)
    except Exception:
        return 64 << 20      # v7x has the smallest VMEM -- be conservative.


def _vmem_estimate(batch_tile, n_dims, m, R, param_itemsize, compute_itemsize):
    # Double-buffered x tile + cores (constant index_map -> DMA'd once, but the
    # pipeline still reserves 2 buffers) + double-buffered output row +
    # in-kernel temporaries (z, xi in compute dtype; v old/new in f32).
    return (2 * n_dims * m * batch_tile * param_itemsize
            + 2 * n_dims * R * R * m * param_itemsize
            + 2 * batch_tile * 4
            + (R * m + m) * batch_tile * compute_itemsize
            + 2 * R * batch_tile * 4)


def _choose_batch_tile(B, n_dims, m, R, param_itemsize, compute_itemsize, vmem_cap):
    budget = int(vmem_cap * 0.60)        # headroom: ~40 MiB of v7x's 64 MiB
    per_elem = (2 * n_dims * m * param_itemsize + 2 * 4
                + (R * m + m) * compute_itemsize + 2 * R * 4)
    fixed = 2 * n_dims * R * R * m * param_itemsize
    avail = max(budget - fixed, 128 * per_elem)
    bt = (int(avail // per_elem) // 128) * 128
    bt = int(max(128, min(bt, 8192)))
    # v7x has 2 TensorCores: target >= 4 grid steps (>= 2 per core) when B
    # permits, so both cores get work and DMA/compute overlap; never below 128.
    if pl.cdiv(B, bt) < 4:
        bt_for_4 = pl.cdiv(pl.cdiv(B, 4), 128) * 128
        bt = max(128, min(bt, bt_for_4))
    return int(bt)


# ---------------------------------------------------------------------------
# Wrappers
# ---------------------------------------------------------------------------
def prepare_cores(Gs, *, param_dtype=jnp.bfloat16):
    """One-time core preprocessing -- hoist this out of the per-call path.

    Zero-pads every core to [R, m, R] and rearranges to W_i[q, p*m + j] =
    G_i[p, j, q], stacked to (n_dims, R, R*m) in param_dtype.
    """
    n_dims = len(Gs)
    assert n_dims >= 1
    m = Gs[0].shape[1]
    assert Gs[0].shape[0] == 1 and Gs[-1].shape[2] == 1, "boundary TT ranks must be 1"
    R = max(max(G.shape[0], G.shape[2]) for G in Gs)
    w_list = []
    for G in Gs:
        rp, mm, rn = G.shape
        assert mm == m
        Gp = jnp.zeros((R, m, R), jnp.float32).at[:rp, :, :rn].set(
            jnp.asarray(G, jnp.float32))
        w_list.append(jnp.transpose(Gp, (2, 0, 1)).reshape(R, R * m))
    return jnp.stack(w_list, axis=0).astype(param_dtype)        # (n_dims, R, R*m)


def tt_forward_prepared(xt, g, *, batch_tile=None, compute_dtype=jnp.float32):
    """Hot path.  xt: [n_dims, m, B] already in kernel layout/dtype;
    g: prepare_cores(Gs).  Returns [B] float32."""
    n_dims, m, B = xt.shape
    R = g.shape[1]
    assert g.shape == (n_dims, R, R * m)

    p_item = jnp.dtype(xt.dtype).itemsize
    c_item = jnp.dtype(compute_dtype).itemsize
    vmem_cap = _vmem_capacity_bytes()
    if batch_tile is None:
        batch_tile = _choose_batch_tile(B, n_dims, m, R, p_item, c_item, vmem_cap)
    assert batch_tile % 128 == 0, "batch_tile must be a multiple of 128 (lane width)"

    num_tiles = int(pl.cdiv(B, batch_tile))
    B_pad = num_tiles * batch_tile
    if B_pad != B:
        xt = jnp.pad(xt, ((0, 0), (0, 0), (0, B_pad - B)))

    est = _vmem_estimate(batch_tile, n_dims, m, R, p_item, c_item)
    cp_kwargs = dict(dimension_semantics=("parallel",))
    if est > (16 << 20):     # smallest scoped default (v5e); never cap below est
        cp_kwargs["vmem_limit_bytes"] = min(max(int(est * 5 // 4), 32 << 20),
                                            int(vmem_cap))

    kernel = functools.partial(tt_forward_kernel, compute_dtype=compute_dtype)

    # TODO(synk): for production-size cores on v7x, pin `g` in a VMEM scratch via
    # a one-shot DMA (or pl.Buffered(1)) to drop its second pipeline buffer.
    out = pl.pallas_call(
        kernel,
        out_shape=jax.ShapeDtypeStruct((1, B_pad), jnp.float32),
        grid_spec=pltpu.PrefetchScalarGridSpec(
            num_scalar_prefetch=0,
            grid=(num_tiles,),
            in_specs=[
                pl.BlockSpec((n_dims, m, batch_tile), lambda b: (0, 0, b)),
                pl.BlockSpec((n_dims, R, R * m), lambda b: (0, 0, 0)),
            ],
            out_specs=pl.BlockSpec((1, batch_tile), lambda b: (0, b)),
        ),
        compiler_params=pltpu.CompilerParams(**cp_kwargs),
    )(xt, g)

    return out[0, :B]


def tt_forward(x, Gs, *, batch_tile=None, param_dtype=jnp.bfloat16,
               compute_dtype=jnp.float32):
    """Drop-in forward: x [B, n_dims, m], Gs = TT cores.  Returns [B] float32.

    NOTE (perf): for a memory-bound kernel the transpose/cast of x below costs
    ~3x the kernel's own x traffic.  In production keep x in [n_dims, m, B]
    param_dtype layout upstream and call tt_forward_prepared directly, with
    prepare_cores() hoisted to parameter-setup time.
    On v6e/v7x pass compute_dtype=jnp.bfloat16 to feed the MXU bf16 x bf16
    (TT state stays f32); keep the f32 default on v5e (no bf16 VALU) or when
    tight agreement with the f32 reference is required.
    """
    B, n_dims, m = x.shape
    assert len(Gs) == n_dims
    g = prepare_cores(Gs, param_dtype=param_dtype)
    xt = jnp.transpose(x, (1, 2, 0)).astype(param_dtype)
    return tt_forward_prepared(xt, g, batch_tile=batch_tile,
                               compute_dtype=compute_dtype)


# ---------------------------------------------------------------------------
# Pure-JAX reference & parameter init (mirrors the PyTorch module)
# ---------------------------------------------------------------------------
def tt_forward_ref(x, Gs):
    """Pure-JAX reference matching the PyTorch forward exactly (f32)."""
    contracted = [jnp.einsum('bm,pmq->bpq', x[:, i].astype(jnp.float32),
                             G.astype(jnp.float32))
                  for i, G in enumerate(Gs)]
    res = contracted[0]
    for c in contracted[1:]:
        res = jnp.einsum('bij,bjk->bik', res, c)
    return res[:, 0, 0]


def make_tt_params(key, n_dims, rang, m):
    """Mirror TTNetwork.randomly_generated / create_param (randn / sqrt(prod(shape[:-1])))."""
    Gs = []
    keys = jax.random.split(key, n_dims)
    for i in range(n_dims):
        r_prev = 1 if i == 0 else rang
        r_next = 1 if i == n_dims - 1 else rang
        shape = (r_prev, m, r_next)
        scale = 1.0 / jnp.sqrt(jnp.prod(jnp.array(shape[:-1], jnp.float32)))
        Gs.append(jax.random.normal(keys[i], shape, jnp.float32) * scale)
    return Gs


if __name__ == "__main__":
    key = jax.random.PRNGKey(0)
    k_x, k_g, k_x2 = jax.random.split(key, 3)

    # Small, module-consistent shapes.
    B, n_dims, m, rang = 8, 3, 16, 4
    x = jax.random.normal(k_x, (B, n_dims, m), jnp.float32)
    Gs = make_tt_params(k_g, n_dims, rang, m)

    y = tt_forward(x, Gs)
    jax.block_until_ready(y)
    assert y.shape == (B,)

    # Tight check: reference run on the same bf16-rounded inputs the kernel
    # sees (isolates contraction logic from the intentional bf16 input cast).
    x_q = x.astype(jnp.bfloat16).astype(jnp.float32)
    Gs_q = [G.astype(jnp.bfloat16).astype(jnp.float32) for G in Gs]
    y_ref_q = tt_forward_ref(x_q, Gs_q)
    assert jnp.allclose(y, y_ref_q, atol=1e-4, rtol=1e-3), (y, y_ref_q)

    # Second case: exercises the multi-tile grid path, auto-chosen batch_tile
    # (>= 2 grid steps) and batch padding; looser tolerance -- its purpose is
    # to validate tiling/padding logic, not numerics.
    B2 = 600
    x2 = jax.random.normal(k_x2, (B2, n_dims, m), jnp.float32)
    y2 = tt_forward(x2, Gs)
    jax.block_until_ready(y2)
    assert y2.shape == (B2,)
    y2_ref_q = tt_forward_ref(x2.astype(jnp.bfloat16).astype(jnp.float32), Gs_q)
    assert jnp.allclose(y2, y2_ref_q, atol=1e-3, rtol=1e-2), \
        float(jnp.max(jnp.abs(y2 - y2_ref_q)))

    # Informational: distance to the full-f32 reference (bf16 input rounding only).
    _ = float(jnp.max(jnp.abs(y - tt_forward_ref(x, Gs))))

    print("KERNEL_OK")
</pallas_src>

<mosaic_0001>
module attributes {stable_mosaic.version = 11 : i64} {
  func.func @tt_forward_kernel(%arg0: i32, %arg1: memref<3x16x128xbf16, #tpu.memory_space<vmem>>, %arg2: memref<3x4x64xbf16, #tpu.memory_space<vmem>>, %arg3: memref<1x128xf32, #tpu.memory_space<vmem>>) attributes {dimension_semantics = [#tpu.dimension_semantics<parallel>], iteration_bounds = array<i64: 1>, scalar_prefetch = 0 : i64, scratch_operands = 0 : i64, tpu.core_type = #tpu.core_type<tc>, window_params = [{transform_indices = @transform_0, window_bounds = array<i64: 3, 16, 128>}, {pipeline_mode = #tpu.pipeline_mode<synchronous>, transform_indices = @transform_1, window_bounds = array<i64: 3, 4, 64>}, {transform_indices = @transform_2, window_bounds = array<i64: 1, 128>}]} {
    %c0 = arith.constant 0 : index
    %c0_0 = arith.constant 0 : index
    %c0_1 = arith.constant 0 : index
    %0 = vector.load %arg2[%c0, %c0_0, %c0_1] : memref<3x4x64xbf16, #tpu.memory_space<vmem>>, vector<1x4x64xbf16>
    %1 = vector.shape_cast %0 : vector<1x4x64xbf16> to vector<4x64xbf16>
    %2 = vector.extract_strided_slice %1 {offsets = [0, 0], sizes = [4, 16], strides = [1, 1]} : vector<4x64xbf16> to vector<4x16xbf16>
    %3 = arith.extf %2 : vector<4x16xbf16> to vector<4x16xf32>
    %c0_2 = arith.constant 0 : index
    %c0_3 = arith.constant 0 : index
    %c0_4 = arith.constant 0 : index
    %4 = vector.load %arg1[%c0_2, %c0_3, %c0_4] : memref<3x16x128xbf16, #tpu.memory_space<vmem>>, vector<1x16x128xbf16>
    %5 = vector.shape_cast %4 : vector<1x16x128xbf16> to vector<16x128xbf16>
    %6 = arith.extf %5 : vector<16x128xbf16> to vector<16x128xf32>
    %cst = arith.constant dense<0.000000e+00> : vector<4x128xf32>
    %7 = tpu.matmul %3, %6, %cst {dimension_numbers = #tpu.dot_dimension_numbers<[1], [0], [0], [1], [0, 0, 1, 1], [], []>} : vector<4x16xf32>, vector<16x128xf32>, vector<4x128xf32> -> vector<4x128xf32>
    %c1 = arith.constant 1 : index
    %c0_5 = arith.constant 0 : index
    %c0_6 = arith.constant 0 : index
    %8 = vector.load %arg1[%c1, %c0_5, %c0_6] : memref<3x16x128xbf16, #tpu.memory_space<vmem>>, vector<1x16x128xbf16>
    %9 = vector.shape_cast %8 : vector<1x16x128xbf16> to vector<16x128xbf16>
    %10 = arith.extf %9 : vector<16x128xbf16> to vector<16x128xf32>
    %11 = vector.shape_cast %7 : vector<4x128xf32> to vector<4x1x128xf32>
    %12 = vector.shape_cast %10 : vector<16x128xf32> to vector<1x16x128xf32>
    %13 = vector.broadcast %11 : vector<4x1x128xf32> to vector<4x16x128xf32>
    %14 = vector.broadcast %12 : vector<1x16x128xf32> to vector<4x16x128xf32>
    %15 = arith.mulf %13, %14 : vector<4x16x128xf32>
    %16 = vector.shape_cast %15 : vector<4x16x128xf32> to vector<64x128xf32>
    %c1_7 = arith.constant 1 : index
    %c0_8 = arith.constant 0 : index
    %c0_9 = arith.constant 0 : index
    %17 = vector.load %arg2[%c1_7, %c0_8, %c0_9] : memref<3x4x64xbf16, #tpu.memory_space<vmem>>, vector<1x4x64xbf16>
    %18 = vector.shape_cast %17 : vector<1x4x64xbf16> to vector<4x64xbf16>
    %19 = arith.extf %18 : vector<4x64xbf16> to vector<4x64xf32>
    %cst_10 = arith.constant dense<0.000000e+00> : vector<4x128xf32>
    %20 = tpu.matmul %19, %16, %cst_10 {dimension_numbers = #tpu.dot_dimension_numbers<[1], [0], [0], [1], [0, 0, 1, 1], [], []>} : vector<4x64xf32>, vector<64x128xf32>, vector<4x128xf32> -> vector<4x128xf32>
    %c2 = arith.constant 2 : index
    %c0_11 = arith.constant 0 : index
    %c0_12 = arith.constant 0 : index
    %21 = vector.load %arg1[%c2, %c0_11, %c0_12] : memref<3x16x128xbf16, #tpu.memory_space<vmem>>, vector<1x16x128xbf16>
    %22 = vector.shape_cast %21 : vector<1x16x128xbf16> to vector<16x128xbf16>
    %23 = arith.extf %22 : vector<16x128xbf16> to vector<16x128xf32>
    %24 = vector.shape_cast %20 : vector<4x128xf32> to vector<4x1x128xf32>
    %25 = vector.shape_cast %23 : vector<16x128xf32> to vector<1x16x128xf32>
    %26 = vector.broadcast %24 : vector<4x1x128xf32> to vector<4x16x128xf32>
    %27 = vector.broadcast %25 : vector<1x16x128xf32> to vector<4x16x128xf32>
    %28 = arith.mulf %26, %27 : vector<4x16x128xf32>
    %29 = vector.shape_cast %28 : vector<4x16x128xf32> to vector<64x128xf32>
    %c2_13 = arith.constant 2 : index
    %c0_14 = arith.constant 0 : index
    %c0_15 = arith.constant 0 : index
    %30 = vector.load %arg2[%c2_13, %c0_14, %c0_15] : memref<3x4x64xbf16, #tpu.memory_space<vmem>>, vector<1x4x64xbf16>
    %31 = vector.shape_cast %30 : vector<1x4x64xbf16> to vector<4x64xbf16>
    %32 = vector.extract_strided_slice %31 {offsets = [0, 0], sizes = [1, 64], strides = [1, 1]} : vector<4x64xbf16> to vector<1x64xbf16>
    %33 = arith.extf %32 : vector<1x64xbf16> to vector<1x64xf32>
    %cst_16 = arith.constant dense<0.000000e+00> : vector<1x128xf32>
    %34 = tpu.matmul %33, %29, %cst_16 {dimension_numbers = #tpu.dot_dimension_numbers<[1], [0], [0], [1], [0, 0, 1, 1], [], []>} : vector<1x64xf32>, vector<64x128xf32>, vector<1x128xf32> -> vector<1x128xf32>
    %c0_17 = arith.constant 0 : index
    %c0_18 = arith.constant 0 : index
    %35 = vector.load %arg3[%c0_17, %c0_18] : memref<1x128xf32, #tpu.memory_space<vmem>>, vector<1x128xf32>
    tpu.vector_store %arg3[%c0_17, %c0_18], %34 {strides = array<i32>} : memref<1x128xf32, #tpu.memory_space<vmem>>, vector<1x128xf32>,
    return
  }
  func.func @transform_0(%arg0: i32) -> (i32, i32, i32) {
    %c0_i32 = arith.constant 0 : i32
    %c0_i32_0 = arith.constant 0 : i32
    %c0_i32_1 = arith.constant 0 : i32
    return %c0_i32, %c0_i32_0, %arg0 : i32, i32, i32
  }
  func.func @transform_1(%arg0: i32) -> (i32, i32, i32) {
    %c0_i32 = arith.constant 0 : i32
    %c0_i32_0 = arith.constant 0 : i32
    %c0_i32_1 = arith.constant 0 : i32
    %c0_i32_2 = arith.constant 0 : i32
    return %c0_i32, %c0_i32_0, %c0_i32_1 : i32, i32, i32
  }
  func.func @transform_2(%arg0: i32) -> (i32, i32) {
    %c0_i32 = arith.constant 0 : i32
    %c0_i32_0 = arith.constant 0 : i32
    return %c0_i32, %arg0 : i32, i32
  }
}

</mosaic_0001>

<bundles_post_ra>
// kernel: tpu_custom_call.1
= control target key start
LH: loop header
LB: loop body
LE: loop exit
PB: predicated region body
PF: predicated region fallthrough
CT: control target
= control target key end

     0   :  { %7 = vsyncpa [#allocation3], 0  ;;  %s620_s0 = inlined_call_operand.hbm [shape: bf16[3,16,128], index: 0, kind: input, shape index: {}]   ;;  %s621_s1 = inlined_call_operand.hbm [shape: bf16[3,4,64], index: 1, kind: input, shape index: {}]   ;;  %s622_s2 = inlined_call_operand.hbm [shape: f32[1,128], index: 2, kind: output, shape index: {}]  }
   0x1   :  { %8 = vsyncpa [#allocation6], 0 }
   0x2   :  { %9 = vsyncpa [#allocation4], 0  ;;  %s563_s9 = smov [#allocation2]  }
   0x3   :  { %s15_s10 = sshll.u32 %s563_s9, 4  ;;  %s16_s10 = int_to_ptr.vmem [resolvable:$true] %s15_s10 }
   0x4   :  { %s505_s11 = scalar_lea.vmem %s16_s10, 384  ;;  %p510_p1 = scmp.lt.s32.totalorder %s16_s10, %s16_s10 }
   0x5   :  { %p506_p0 = scmp.ne.s32.totalorder %s16_s10, %s505_s11  ;;  %p511_p2 = scmp.lt.s32.totalorder %s505_s11, %s505_s11 }
   0x7   :  { %p512_p3 = por %p511_p2, %p510_p1 }
   0x9   :  { %p513_p4 = pnand %p512_p3, %p506_p0 }
   0xb   :  { %516 = shalt.err (!%p513_p4)
}
   0xc   :  { %s564_s12 = smov 64   ;;  %s565_s13 = smov 4  }
   0xd   :  { %21 = dma.hbm_to_vmem [thread:$0]  %s620_s0, 384, %s16_s10, [#allocation3], %s564_s12, %s564_s12, %s565_s13  }
   0xe   :  { %s566_s16 = smov [#allocation5]  }
   0xf   :  { %s27_s17 = sshll.u32 %s566_s16, 4  ;;  %s28_s17 = int_to_ptr.vmem [resolvable:$true] %s27_s17 }
  0x10   :  { %s525_s18 = scalar_lea.vmem %s28_s17, 96  ;;  %p530_p6 = scmp.lt.s32.totalorder %s28_s17, %s28_s17 }
  0x11   :  { %p526_p5 = scmp.ne.s32.totalorder %s28_s17, %s525_s18  ;;  %p531_p7 = scmp.lt.s32.totalorder %s525_s18, %s525_s18 }
  0x13   :  { %p532_p8 = por %p531_p7, %p530_p6 }
  0x15   :  { %p533_p9 = pnand %p532_p8, %p526_p5 }
  0x17   :  { %536 = shalt.err (!%p533_p9)
}
  0x18   :  { %s567_s19 = smov 32   ;;  %s568_s20 = smov 2  }
  0x19   :  { %33 = dma.hbm_to_vmem [thread:$0]  %s621_s1, 96, %s28_s17, [#allocation6], %s567_s19, %s567_s19, %s568_s20  }
  0x1a   :  { %557 = dma.done.wait [#allocation3], 384  }
  0x1b   :  { %558 = vsyncadd [#allocation3], 4294966912 }
  0x1c   :  { %559 = dma.done.wait [#allocation6], 96  }
  0x1d   :  { %560 = vsyncadd [#allocation6], 4294967200  ;;  %v569_v0 = vmov 0.0   ;;  %vm570_vm0 = vmmov 0   ;;  %v410_v1 = vld [vmem:[#allocation2] sm:$0xff]   ;;  %vm46_vm1 = vcmask 130048   ;;  %v129_v8 = vlaneseq }
  0x1e   :  { %442 = vmatprep.subr.mxu0 %v569_v0  ;;  %446 = vmatprep.mubr.msk.f32.mxu0 %vm570_vm0, %v569_v0  ;;  %v40_v2 = vld [vmem:[#allocation5] sm:$0x3]  ;;  %v411_v3 = vunpack.c.l.bf16 %v410_v1  ;;  %v412_v4 = vunpack.c.h.bf16 %v410_v1  ;;  %v571_v6 = vmov 1966171168   ;;  %v414_v18 = vld [vmem:[#allocation2 + $0x8] sm:$0xff]   ;;  %vm181_vm2 = vcmask 523264  }
  0x1f   :  { %449 = vmatprep.subr.mxu1 %v569_v0  ;;  %465 = vmatprep.mubr.msk.f32.mxu1 %vm570_vm0, %v569_v0  ;;  %v41_v5 = vunpack.c.l.bf16 %v40_v2  ;;  %v127_v7 = vunpack.c.l.s4 %v571_v6  ;;  %v130_v10 = vshrl.u32 %v129_v8, 7  ;;  %v416_v22 = vunpack.c.h.bf16 %v414_v18  ;;  %v179_v34 = vld [vmem:[#allocation5 + $0x2] sm:$0x3]  ;;  %v418_v44 = vld [vmem:[#allocation2 + $0x10] sm:$0xff]   ;;  %v314_v59 = vld [vmem:[#allocation5 + $0x4] sm:$0x3] }
  0x20   :  { %443 = vmatpush3.msra.mxu0 %v412_v4  ;;  %v415_v24 = vunpack.c.l.bf16 %v414_v18  ;;  %v180_v36 = vunpack.c.l.bf16 %v179_v34  ;;  %v420_v47 = vunpack.c.h.bf16 %v418_v44  ;;  %v419_v49 = vunpack.c.l.bf16 %v418_v44  ;;  %s572_s0 = smov [#allocation7]  }
  0x21   :  { %444 = vmatprep.subr.mxu0 %v569_v0  ;;  %v128_v9 = vunpack.c.0.s8 %v127_v7  ;;  %v152_v20 = vsub.s32 0, %v130_v10  ;;  %v315_v61 = vunpack.c.l.bf16 %v314_v59  ;;  %s396_s1 = sshll.u32 %s572_s0, 4  ;;  %s397_s1 = int_to_ptr.vmem [resolvable:$true] %s396_s1 }
  0x22   :  { %445 = vmatpush3.msra.mxu0 %v411_v3  ;;  %s537_s23 = scalar_lea.vmem %s397_s1, 16  ;;  %s541_s24 = scalar_lea.vmem %s397_s1, 32 }
  0x23   :  { %447 = vmatmul.mubr.msk.f32.vlgmr.msra.gmra.mxu0 %vm46_vm1, %v41_v5  ;;  %468 = vmatprep.subr.mxu0 %v569_v0  ;;  %v131_v11 = vsub.s32 %v128_v9, %v130_v10  ;;  %p538_p10 = scmp.ne.s32.totalorder %s397_s1, %s537_s23  ;;  %p542_p11 = scmp.lt.s32.totalorder %s397_s1, %s397_s1 }
  0x24   :  { %484 = vmatprep.mubr.msk.f32.mxu0 %vm570_vm0, %v569_v0  ;;  %p543_p12 = scmp.lt.s32.totalorder %s541_s24, %s537_s23 }
  0x26   :  { %p544_p13 = por %p543_p12, %p542_p11 }
  0x28   :  { %p545_p0 = pnand %p544_p13, %p538_p10 }
  0xe3   :  { %v116_v12 = vpop.f32.mrf.mxu0 }
  0xe4   :  { %v132_v13 = vrot.slane %v116_v12, %v131_v11 }
  0xe5   :  { %v448_v14 = vpop.f32.mrf.mxu0 }
  0xe6   :  { %v133_v15 = vcombine.high %v132_v13, %v132_v13  ;;  %v140_v16 = vrot.slane %v132_v13, %v131_v11 }
  0xe8   :  { %v147_v17 = vrot.slane %v133_v15, %v131_v11  ;;  %v148_v19 = vcombine.high %v140_v16, %v140_v16  ;;  %v153_v31 = vrot.slane %v140_v16, %v152_v20 }
  0xea   :  { %v149_v21 = vcombine.high %v147_v17, %v147_v17  ;;  %v161_v26 = vrot.slane %v148_v19, %v152_v20  ;;  %v157_v29 = vrot.slane %v147_v17, %v152_v20  ;;  %v171_v35 = vmul.f32 %v416_v22, %v153_v31 }
  0xeb   :  { %v170_v37 = vmul.f32 %v415_v24, %v153_v31 }
  0xec   :  { %v165_v23 = vrot.slane %v149_v21, %v152_v20  ;;  %v175_v28 = vmul.f32 %v416_v22, %v161_v26  ;;  %v174_v30 = vmul.f32 %v415_v24, %v161_v26  ;;  %v173_v32 = vmul.f32 %v416_v22, %v157_v29 }
  0xed   :  { %v172_v33 = vmul.f32 %v415_v24, %v157_v29 }
  0xee   :  { %v177_v25 = vmul.f32 %v416_v22, %v165_v23  ;;  %v176_v27 = vmul.f32 %v415_v24, %v165_v23 }
  0xf0   :  { %450 = vmatpush3.msra.mxu1 %v177_v25 }
  0xf1   :  { %451 = vmatprep.subr.mxu1 %v569_v0 }
  0xf2   :  { %452 = vmatpush3.msra.mxu1 %v176_v27 }
  0xf3   :  { %453 = vmatprep.subr.mxu1 %v569_v0 }
  0xf4   :  { %454 = vmatpush3.msra.mxu1 %v175_v28 }
  0xf5   :  { %455 = vmatprep.subr.mxu1 %v569_v0 }
  0xf6   :  { %456 = vmatpush3.msra.mxu1 %v174_v30 }
  0xf7   :  { %457 = vmatprep.subr.mxu1 %v569_v0 }
  0xf8   :  { %458 = vmatpush3.msra.mxu1 %v173_v32 }
  0xf9   :  { %459 = vmatprep.subr.mxu1 %v569_v0 }
  0xfa   :  { %460 = vmatpush3.msra.mxu1 %v172_v33 }
  0xfb   :  { %461 = vmatprep.subr.mxu1 %v569_v0 }
  0xfc   :  { %462 = vmatpush3.msra.mxu1 %v171_v35 }
  0xfd   :  { %463 = vmatprep.subr.mxu1 %v569_v0 }
  0xfe   :  { %464 = vmatpush3.msra.mxu1 %v170_v37 }
  0xff   :  { %466 = vmatmul.mubr.msk.f32.vlgmr.msra.gmra.mxu1 %vm181_vm2, %v180_v36 }
 0x1bf   :  { %v251_v38 = vpop.f32.mrf.mxu1 }
 0x1c0   :  { %v267_v39 = vrot.slane %v251_v38, %v131_v11 }
 0x1c1   :  { %v467_v40 = vpop.f32.mrf.mxu1 }
 0x1c2   :  { %v268_v41 = vcombine.high %v267_v39, %v267_v39  ;;  %v275_v42 = vrot.slane %v267_v39, %v131_v11 }
 0x1c4   :  { %v282_v43 = vrot.slane %v268_v41, %v131_v11  ;;  %v283_v45 = vcombine.high %v275_v42, %v275_v42  ;;  %v288_v56 = vrot.slane %v275_v42, %v152_v20 }
 0x1c6   :  { %v284_v46 = vcombine.high %v282_v43, %v282_v43  ;;  %v296_v50 = vrot.slane %v283_v45, %v152_v20  ;;  %v292_v53 = vrot.slane %v282_v43, %v152_v20  ;;  %v306_v60 = vmul.f32 %v420_v47, %v288_v56 }
 0x1c7   :  { %v305_v62 = vmul.f32 %v419_v49, %v288_v56 }
 0x1c8   :  { %v300_v48 = vrot.slane %v284_v46, %v152_v20  ;;  %v310_v54 = vmul.f32 %v420_v47, %v296_v50  ;;  %v309_v55 = vmul.f32 %v419_v49, %v296_v50  ;;  %v308_v57 = vmul.f32 %v420_v47, %v292_v53 }
 0x1c9   :  { %v307_v58 = vmul.f32 %v419_v49, %v292_v53 }
 0x1ca   :  { %v312_v51 = vmul.f32 %v420_v47, %v300_v48  ;;  %v311_v52 = vmul.f32 %v419_v49, %v300_v48 }
 0x1cc   :  { %469 = vmatpush3.msra.mxu0 %v312_v51 }
 0x1cd   :  { %470 = vmatprep.subr.mxu0 %v569_v0 }
 0x1ce   :  { %471 = vmatpush3.msra.mxu0 %v311_v52 }
 0x1cf   :  { %472 = vmatprep.subr.mxu0 %v569_v0 }
 0x1d0   :  { %473 = vmatpush3.msra.mxu0 %v310_v54 }
 0x1d1   :  { %474 = vmatprep.subr.mxu0 %v569_v0 }
 0x1d2   :  { %475 = vmatpush3.msra.mxu0 %v309_v55 }
 0x1d3   :  { %476 = vmatprep.subr.mxu0 %v569_v0 }
 0x1d4   :  { %477 = vmatpush3.msra.mxu0 %v308_v57 }
 0x1d5   :  { %478 = vmatprep.subr.mxu0 %v569_v0 }
 0x1d6   :  { %479 = vmatpush3.msra.mxu0 %v307_v58 }
 0x1d7   :  { %480 = vmatprep.subr.mxu0 %v569_v0 }
 0x1d8   :  { %481 = vmatpush3.msra.mxu0 %v306_v60 }
 0x1d9   :  { %482 = vmatprep.subr.mxu0 %v569_v0 }
 0x1da   :  { %483 = vmatpush3.msra.mxu0 %v305_v62 }
 0x1db   :  { %485 = vmatmul.mubr.msk.f32.vlgmr.msra.gmra.mxu0 %vm181_vm2, %v315_v61 }
 0x29b   :  { %v385_v63 = vpop.f32.mrf.mxu0 }
 0x29c   :  { %389 = vst [vmem:[#allocation7] sm:$0x1] %v385_v63 }
 0x29d   :  { %v486_v1 = vpop.f32.mrf.mxu0 }
 0x29e   :  { %548 = shalt.err (!%p545_p0)
}
 0x29f   :  { %399 = dma.vmem_to_hbm [thread:$0]  %s397_s1, 16, %s622_s2, [#allocation4]  }
 0x2a0   :  { %561 = dma.done.wait [#allocation4], 16  }
 0x2a1   :  { %562 = vsyncadd [#allocation4], 4294967280 }
 0x2a2   :  { %403 = vsyncpa [#allocation3], 1 }
 0x2a3   :  { %404 = vsyncpa [#allocation6], 1 }
 0x2a4   :  { %405 = vsyncpa [#allocation4], 1 }

</bundles_post_ra>
